<compile_context>
chip_gen: v7x
topology: tpu7x:2x2x1
jax: 0.10.0
libtpu: 0.0.40
codegen_flags: <defaults>
</compile_context>

<pallas_src>
import itertools

import jax
import jax.numpy as jnp
from jax import lax
from jax.experimental import pallas as pl
from jax.experimental.pallas import tpu as pltpu


_BLOCK_BUDGET_BYTES = 4 * 1024 * 1024       # target output-block size
_VMEM_LIMIT_BYTES = 32 * 1024 * 1024        # scoped VMEM request (ok v5e..v7x)
_VMEM_HARD_CAP_BYTES = 24 * 1024 * 1024     # above this footprint -> jnp.tile
_STORE_VALUE_BYTES = 128 * 1024             # max live value per store (~32 vregs)
_UNROLL_LIMIT = 16                          # max statically unrolled stores
_SPLIT_THRESHOLD_BYTES = 512 * 1024         # split 1-step grids above this (v7x)


def _sublane_align(itemsize):
    """Dtype-aware sublane granularity: 8 for f32, 16 for bf16, 32 for int8."""
    return max(8, 8 * (4 // max(1, itemsize)))


def _largest_divisor_leq(n, cap, multiple_of=1):
    """Largest divisor of n that is <= cap and a multiple of `multiple_of`."""
    best = None
    cap = min(n, cap)
    if cap < 1:
        return None
    i = 1
    while i * i <= n:
        if n % i == 0:
            for d in (i, n // i):
                if d <= cap and d % multiple_of == 0 and (best is None or d > best):
                    best = d
        i += 1
    return best


def _pick_fold(r, cap, base, align):
    """Largest divisor f of r with f <= cap and (f == r or (base*f) % align == 0)."""
    best = 1
    i = 1
    while i * i <= r:
        if r % i == 0:
            for f in (i, r // i):
                if f <= cap and f > best and (f == r or (base * f) % align == 0):
                    best = f
        i += 1
    return best


def _collapse_dims(shape, repeats):
    """Merge each dim with its immediately-following repeat==1 dims.

    Row-major flattening makes this exact: tiling dim i while leaving the
    trailing dims untouched equals tiling the flattened group.  Leading
    repeat==1 dims form their own (repeat==1) group.  This maximizes the lane
    extent of the kernel problem (lane-dense output slabs).
    """
    groups = []
    i, n = 0, len(shape)
    while i < n:
        size, rep = shape[i], repeats[i]
        j = i + 1
        while j < n and repeats[j] == 1:
            size *= shape[j]
            j += 1
        groups.append((size, rep))
        i = j
    return tuple(g[0] for g in groups), tuple(g[1] for g in groups)


def _choose_tiling(shape, repeats, itemsize, budget_bytes, sub_align):
    """Pick the input block shape and per-dim fold factors.

    in_block[i] <= shape[i]; if repeats[i] > 1 then in_block[i] divides
    shape[i].  fold[i] divides repeats[i] and is > 1 only when
    in_block[i] == shape[i]; fold[i] repeats are materialized inside one
    output block, the remaining repeats[i] // fold[i] become grid axes.
    """
    n = len(shape)
    budget_elems = max(1, budget_bytes // max(1, itemsize))
    in_block = [1] * n

    # ---- last dim (lane): as wide as the budget allows, 128-aligned --------
    d, r = shape[-1], repeats[-1]
    min_rows = sub_align if n >= 2 else 1
    lane_cap = max(128, (budget_elems // min_rows) // 128 * 128)
    if d <= lane_cap:
        ib = d
    elif r == 1:
        ib = lane_cap                              # masked tail block is fine
    else:
        ib = _largest_divisor_leq(d, lane_cap, 128) or d
    in_block[-1] = ib
    elems = ib

    # ---- second-to-last dim (sublane), dtype-aware alignment ---------------
    if n >= 2:
        d, r = shape[-2], repeats[-2]
        cap = max(1, budget_elems // elems)
        if d <= cap:
            ib = d
        elif r == 1:
            ib = min(d, max(sub_align, (cap // sub_align) * sub_align))
        else:
            ib = (_largest_divisor_leq(d, cap, sub_align)
                  or _largest_divisor_leq(d, cap, 8)
                  or d)
        in_block[-2] = ib
        elems *= ib

    # ---- leading dims -------------------------------------------------------
    for i in range(n - 3, -1, -1):
        d, r = shape[i], repeats[i]
        cap = max(1, budget_elems // elems)
        if d <= cap:
            ib = d
        elif r == 1:
            ib = min(d, cap)
        else:
            ib = _largest_divisor_leq(d, cap, 1) or 1
        in_block[i] = ib
        elems *= ib

    # ---- fold repeats into the output block (lane dim gets first crack) ----
    fold = [1] * n
    for i in range(n - 1, -1, -1):
        r = repeats[i]
        if r > 1 and in_block[i] == shape[i]:
            cap = budget_elems // max(1, elems)
            if cap >= 2:
                align = 128 if i == n - 1 else (sub_align if i == n - 2 else 1)
                f = _pick_fold(r, cap, in_block[i], align)
                if f > 1:
                    fold[i] = f
                    elems *= f
    return tuple(in_block), tuple(fold)


def _validate_and_fix(shape, repeats, in_block, fold):
    """Enforce the hard (8,128) BlockSpec divisibility rule on in/out blocks.

    If a repeated minor dim is unaligned and the fold does not absorb all of
    its repeats, force the whole dim (and all its repeats) into one block.
    """
    in_block, fold = list(in_block), list(fold)
    n = len(shape)
    for i, align in ((n - 1, 128), (n - 2, 8)):
        if i < 0:
            continue
        ib, f, d, r = in_block[i], fold[i], shape[i], repeats[i]
        ob = ib * f
        in_ok = (ib % align == 0) or (ib == d)
        out_ok = (ob % align == 0) or (ob == d * r)
        if not (in_ok and out_ok):
            in_block[i] = d
            fold[i] = r
    return tuple(in_block), tuple(fold)


def _maybe_split_single_step(shape, repeats, in_block, fold, out_bytes, sub_align):
    """Avoid a one-step grid on big outputs (v7x: use both TensorCores)."""
    n = len(shape)
    num_tiles = [-(-shape[i] // in_block[i]) for i in range(n)]
    steps = 1
    for i in range(n):
        steps *= num_tiles[i] * (repeats[i] // fold[i])
    if steps > 1 or out_bytes < _SPLIT_THRESHOLD_BYTES:
        return in_block, fold
    in_block, fold = list(in_block), list(fold)
    # 1) halve an even fold factor (keeps alignment) -> 2-step repeat axis.
    for i in range(n):
        if fold[i] >= 2 and fold[i] % 2 == 0:
            new_ob = in_block[i] * (fold[i] // 2)
            align = 128 if i == n - 1 else (8 if i == n - 2 else 1)
            if new_ob % align == 0:
                fold[i] //= 2
                return tuple(in_block), tuple(fold)
    # 2) halve an un-repeated input block -> 2 input tiles.
    for i in range(n):
        if repeats[i] == 1 and in_block[i] >= 2:
            if i == n - 1:
                half = ((in_block[i] // 2) // 128) * 128
                ok = half >= 128
            elif i == n - 2:
                half = ((in_block[i] // 2) // sub_align) * sub_align
                ok = half >= sub_align
            else:
                half = in_block[i] // 2
                ok = half >= 1
            if ok:
                in_block[i] = half
                return tuple(in_block), tuple(fold)
    return tuple(in_block), tuple(fold)


def _plan_stores(in_block, fold, itemsize, sub_align):
    """Group the folded copies into stores.

    Folded dims whose source extent is 1 are materialized with a broadcast in
    aligned groups (wide unmasked stores); other folded dims get one store per
    copy.  Returns (store_shape, loop_counts): store_shape[i] is the per-store
    extent, loop_counts[i] the number of stores along dim i.
    """
    n = len(in_block)
    store_shape = list(in_block)
    loop_counts = [1] * n
    val_elems = 1
    for b in in_block:
        val_elems *= b
    budget = max(1, _STORE_VALUE_BYTES // max(1, itemsize))
    for i in range(n - 1, -1, -1):
        if fold[i] <= 1:
            continue
        if in_block[i] == 1:                       # broadcastable folded dim
            cap = max(1, budget // max(1, val_elems))
            align = 128 if i == n - 1 else (sub_align if i == n - 2 else 1)
            g = _pick_fold(fold[i], cap, 1, align)
            if g == 1:
                g = _largest_divisor_leq(fold[i], cap) or 1
            store_shape[i] = g
            loop_counts[i] = fold[i] // g
            val_elems *= g
        else:                                      # per-copy slice stores
            loop_counts[i] = fold[i]
    return tuple(store_shape), tuple(loop_counts)


def _build_copy_kernel(in_block, store_shape, loop_counts, itemsize):
    n = len(in_block)
    has_bcast = any(store_shape[i] != in_block[i] for i in range(n))
    loop_dims = [i for i in range(n) if loop_counts[i] > 1]
    total_stores = 1
    for c in loop_counts:
        total_stores *= c
    in_bytes = itemsize
    for b in in_block:
        in_bytes *= b
    # Keep the live value small: re-read big tiles from the VMEM ref per store
    # (vld slots have slack; spills would compete with the binding vst slot).
    load_once = has_bcast or in_bytes <= _STORE_VALUE_BYTES
    store_shape = tuple(store_shape)

    def kernel(x_ref, o_ref):
        def make_val():
            v = x_ref[...]
            if has_bcast:
                v = pl.broadcast_to(v, store_shape)
            return v

        if total_stores == 1:
            o_ref[...] = make_val() if has_bcast else x_ref[...]
            return

        val = make_val() if load_once else None   # hoisted, loop-invariant

        def store_at(counts):
            idx = []
            for i in range(n):
                if loop_counts[i] > 1:
                    c = counts[i]
                    start = c * store_shape[i]
                    if not isinstance(c, int):
                        start = pl.multiple_of(start, store_shape[i])
                    idx.append(pl.ds(start, store_shape[i]))
                else:
                    idx.append(slice(None))
            o_ref[tuple(idx)] = val if load_once else make_val()

        if total_stores <= _UNROLL_LIMIT:
            for combo in itertools.product(
                    *[range(loop_counts[i]) for i in loop_dims]):
                store_at(dict(zip(loop_dims, combo)))
        else:
            def emit(level, counts):
                if level == len(loop_dims):
                    store_at(counts)
                    return
                dim = loop_dims[level]

                def body(c, carry):
                    emit(level + 1, {**counts, dim: c})
                    return carry

                lax.fori_loop(0, loop_counts[dim], body, 0)

            emit(0, {})

    return kernel


def repeat_pallas(x, repeats, *, block_budget_bytes=_BLOCK_BUDGET_BYTES):
    """Pallas equivalent of torch.Tensor.repeat(*repeats) (i.e. jnp.tile)."""
    repeats = tuple(int(r) for r in repeats)
    if len(repeats) < x.ndim:
        raise ValueError(
            "Number of repeat dims must be >= number of tensor dims "
            f"(got {len(repeats)} vs {x.ndim})")
    # torch.repeat prepends size-1 dims when given more factors than dims.
    if len(repeats) > x.ndim:
        x = jnp.reshape(x, (1,) * (len(repeats) - x.ndim) + tuple(x.shape))

    shape = tuple(x.shape)
    out_shape = tuple(d * r for d, r in zip(shape, repeats))

    if all(r == 1 for r in repeats):
        return x
    if any(r == 0 for r in repeats) or any(d == 0 for d in shape):
        return jnp.zeros(out_shape, x.dtype)

    # Layout plumbing: merge repeat==1 runs into the preceding dim (lane-dense).
    cshape, creps = _collapse_dims(shape, repeats)
    if len(cshape) == 1:                 # pure outer repeat of the flat array
        cshape, creps = (1, cshape[0]), (creps[0], 1)
    xk = jnp.reshape(x, cshape)

    itemsize = x.dtype.itemsize
    sub_align = _sublane_align(itemsize)
    out_cshape = tuple(d * r for d, r in zip(cshape, creps))
    out_bytes_total = itemsize
    for d in out_cshape:
        out_bytes_total *= d

    in_block, fold = _choose_tiling(cshape, creps, itemsize,
                                    block_budget_bytes, sub_align)
    in_block, fold = _validate_and_fix(cshape, creps, in_block, fold)
    in_block, fold = _maybe_split_single_step(cshape, creps, in_block, fold,
                                              out_bytes_total, sub_align)

    out_block = tuple(b * f for b, f in zip(in_block, fold))
    in_bytes, out_bytes = itemsize, itemsize
    for b in in_block:
        in_bytes *= b
    for b in out_block:
        out_bytes *= b
    # Post-check the real VMEM footprint (double-buffered in + out); awkward
    # shapes whose only legal block is too big go to XLA instead of lowering
    # a kernel that would OOM VMEM (notably on v7x's 64 MiB).
    if 2 * (in_bytes + out_bytes) > _VMEM_HARD_CAP_BYTES:
        return jnp.reshape(jnp.tile(xk, creps), out_shape)

    n = len(cshape)
    num_tiles = [-(-cshape[i] // in_block[i]) for i in range(n)]

    # Grid: input-tile axes outermost, repeat axes innermost so the input block
    # index is constant across consecutive steps and Pallas fetches each input
    # tile from HBM exactly once while writing it R times.
    grid = []
    tile_axis = [None] * n
    rep_axis = [None] * n
    for i in range(n):
        if num_tiles[i] > 1:
            tile_axis[i] = len(grid)
            grid.append(num_tiles[i])
    for i in range(n):
        g = creps[i] // fold[i]
        if g > 1:
            rep_axis[i] = len(grid)
            grid.append(g)
    if not grid:
        grid = [1]
    grid = tuple(grid)

    def in_index_map(*idx):
        return tuple(idx[tile_axis[i]] if tile_axis[i] is not None else 0
                     for i in range(n))

    def out_index_map(*idx):
        out = []
        for i in range(n):
            t = idx[tile_axis[i]] if tile_axis[i] is not None else 0
            c = idx[rep_axis[i]] if rep_axis[i] is not None else 0
            out.append(c * num_tiles[i] + t)
        return tuple(out)

    store_shape, loop_counts = _plan_stores(in_block, fold, itemsize, sub_align)
    kernel = _build_copy_kernel(in_block, store_shape, loop_counts, itemsize)

    result = pl.pallas_call(
        kernel,
        out_shape=jax.ShapeDtypeStruct(out_cshape, x.dtype),
        grid=grid,
        in_specs=[pl.BlockSpec(tuple(in_block), in_index_map)],
        out_specs=pl.BlockSpec(tuple(out_block), out_index_map),
        compiler_params=pltpu.CompilerParams(
            dimension_semantics=("parallel",) * len(grid),
            vmem_limit_bytes=_VMEM_LIMIT_BYTES),
    )(xk)
    return jnp.reshape(result, out_shape)


class RepeatLayer:
    """JAX/Pallas mirror of the PyTorch RepeatLayer module."""

    def __init__(self, *args):
        self.args = args  # stateless module; args are the repeat factors

    def __call__(self, x):
        return repeat_pallas(x, self.args)


def _check(y, ref):
    assert y.shape == ref.shape and y.dtype == ref.dtype
    assert bool(jnp.array_equal(y, ref))


if __name__ == "__main__":
    key = jax.random.PRNGKey(0)
    k1, k2, k3, k4, k5, k6 = jax.random.split(key, 6)

    # 1) NCHW input, repeats over batch and H (all repeats folded, single step).
    x1 = jax.random.normal(k1, (2, 4, 8, 128), dtype=jnp.float32)
    y1 = jax.block_until_ready(RepeatLayer(2, 1, 2, 1)(x1))
    _check(y1, jnp.tile(x1, (2, 1, 2, 1)))

    # 2) More repeat factors than dims (torch prepends size-1 dims).
    x2 = jax.random.normal(k2, (4, 8, 128), dtype=jnp.float32)
    y2 = jax.block_until_ready(RepeatLayer(2, 3, 1, 1)(x2))
    _check(y2, jnp.tile(x2, (2, 3, 1, 1)))

    # 3) Multi-step tiled path (tiny budget): trailing repeat==1 dims collapse
    #    into a wide lane dim, tile axis outermost, repeat folded into block.
    x3 = jax.random.normal(k3, (2, 64, 256), dtype=jnp.float32)
    y3 = jax.block_until_ready(
        repeat_pallas(x3, (2, 1, 1), block_budget_bytes=16 * 1024))
    _check(y3, jnp.tile(x3, (2, 1, 1)))

    # 4) bf16 with a repeated last dim (dtype-aware alignment, aligned folds).
    x4 = jax.random.normal(k4, (16, 384), dtype=jnp.bfloat16)
    y4 = jax.block_until_ready(RepeatLayer(1, 2)(x4))
    _check(y4, jnp.tile(x4, (1, 2)))

    # 5) Large outer repeat -> broadcast-grouped stores + single-step split.
    x5 = jax.random.normal(k5, (2, 8, 128), dtype=jnp.float32)
    y5 = jax.block_until_ready(RepeatLayer(64, 1, 1)(x5))
    _check(y5, jnp.tile(x5, (64, 1, 1)))

    # 6) Very large repeat count -> in-kernel fori_loop over aligned groups.
    x6 = jax.random.normal(k6, (8, 128), dtype=jnp.float32)
    y6 = jax.block_until_ready(RepeatLayer(2048, 1)(x6))
    _check(y6, jnp.tile(x6, (2048, 1)))

    print("KERNEL_OK")
</pallas_src>

<mosaic_0001>
module attributes {stable_mosaic.version = 11 : i64} {
  func.func @kernel(%arg0: i32, %arg1: memref<8x1024xf32, #tpu.memory_space<vmem>>, %arg2: memref<16x2048xf32, #tpu.memory_space<vmem>>) attributes {dimension_semantics = [#tpu.dimension_semantics<parallel>], iteration_bounds = array<i64: 1>, scalar_prefetch = 0 : i64, scratch_operands = 0 : i64, tpu.core_type = #tpu.core_type<tc>, window_params = [{pipeline_mode = #tpu.pipeline_mode<synchronous>, transform_indices = @transform_0, window_bounds = array<i64: 8, 1024>}, {pipeline_mode = #tpu.pipeline_mode<synchronous>, transform_indices = @transform_1, window_bounds = array<i64: 16, 2048>}]} {
    %c0 = arith.constant 0 : index
    %c0_0 = arith.constant 0 : index
    %0 = vector.load %arg1[%c0, %c0_0] : memref<8x1024xf32, #tpu.memory_space<vmem>>, vector<8x1024xf32>
    %c0_1 = arith.constant 0 : index
    %c0_2 = arith.constant 0 : index
    %1 = vector.load %arg2[%c0_1, %c0_2] : memref<16x2048xf32, #tpu.memory_space<vmem>>, vector<8x1024xf32>
    tpu.vector_store %arg2[%c0_1, %c0_2], %0 {strides = array<i32>} : memref<16x2048xf32, #tpu.memory_space<vmem>>, vector<8x1024xf32>,
    %c0_3 = arith.constant 0 : index
    %c1024 = arith.constant 1024 : index
    %2 = vector.load %arg2[%c0_3, %c1024] : memref<16x2048xf32, #tpu.memory_space<vmem>>, vector<8x1024xf32>
    tpu.vector_store %arg2[%c0_3, %c1024], %0 {strides = array<i32>} : memref<16x2048xf32, #tpu.memory_space<vmem>>, vector<8x1024xf32>,
    %c8 = arith.constant 8 : index
    %c0_4 = arith.constant 0 : index
    %3 = vector.load %arg2[%c8, %c0_4] : memref<16x2048xf32, #tpu.memory_space<vmem>>, vector<8x1024xf32>
    tpu.vector_store %arg2[%c8, %c0_4], %0 {strides = array<i32>} : memref<16x2048xf32, #tpu.memory_space<vmem>>, vector<8x1024xf32>,
    %c8_5 = arith.constant 8 : index
    %c1024_6 = arith.constant 1024 : index
    %4 = vector.load %arg2[%c8_5, %c1024_6] : memref<16x2048xf32, #tpu.memory_space<vmem>>, vector<8x1024xf32>
    tpu.vector_store %arg2[%c8_5, %c1024_6], %0 {strides = array<i32>} : memref<16x2048xf32, #tpu.memory_space<vmem>>, vector<8x1024xf32>,
    return
  }
  func.func @transform_0(%arg0: i32) -> (i32, i32) {
    %c0_i32 = arith.constant 0 : i32
    %c0_i32_0 = arith.constant 0 : i32
    %c0_i32_1 = arith.constant 0 : i32
    return %c0_i32, %c0_i32_0 : i32, i32
  }
  func.func @transform_1(%arg0: i32) -> (i32, i32) {
    %c0_i32 = arith.constant 0 : i32
    %c0_i32_0 = arith.constant 0 : i32
    %c0_i32_1 = arith.constant 0 : i32
    return %c0_i32, %c0_i32_0 : i32, i32
  }
}

</mosaic_0001>

<bundles_post_ra>
// kernel: tpu_custom_call.1
= control target key start
LH: loop header
LB: loop body
LE: loop exit
PB: predicated region body
PF: predicated region fallthrough
CT: control target
= control target key end

     0   :  { %6 = vsyncpa [#allocation3], 0  ;;  %s175_s0 = inlined_call_operand.hbm [shape: f32[8,1024], index: 0, kind: input, shape index: {}]   ;;  %s176_s1 = inlined_call_operand.hbm [shape: f32[16,2048], index: 1, kind: output, shape index: {}]  }
   0x1   :  { %7 = vsyncpa [#allocation4], 0  ;;  %s130_s6 = smov [#allocation2]   ;;  %s82_s10 = scalar_lea.hbm %s175_s0, 1024 }
   0x2   :  { %s14_s7 = sshll.u32 %s130_s6, 4  ;;  %p83_p0 = scmp.ne.s32.totalorder %s175_s0, %s82_s10  ;;  %s15_s7 = int_to_ptr.vmem [resolvable:$true] %s14_s7 }
   0x3   :  { %p86_p1 = scmp.lt.u32.totalorder %s82_s10, %s175_s0 }
   0x5   :  { %p88_p2 = pnand %p86_p1, %p83_p0 }
   0x7   :  { %91 = shalt.err (!%p88_p2)
}
   0x8   :  { %s92_s15 = scalar_lea.vmem %s15_s7, 1024  ;;  %p97_p4 = scmp.lt.s32.totalorder %s15_s7, %s15_s7 }
   0x9   :  { %p93_p3 = scmp.ne.s32.totalorder %s15_s7, %s92_s15  ;;  %p98_p5 = scmp.lt.s32.totalorder %s92_s15, %s92_s15 }
   0xb   :  { %p99_p6 = por %p98_p5, %p97_p4 }
   0xd   :  { %p100_p7 = pnand %p99_p6, %p93_p3 }
   0xf   :  { %103 = shalt.err (!%p100_p7)
}
  0x10   :  { %17 = dma.hbm_to_vmem [thread:$0]  %s175_s0, 1024, %s15_s7, [#allocation3]  }
  0x11   :  { %126 = dma.done.wait [#allocation3], 1024  }
  0x12   :  { %127 = vsyncadd [#allocation3], 4294966272  ;;  %s131_s18 = smov [#allocation5]   ;;  %v21_v0 = vld [vmem:[#allocation2] sm:$0xff]  ;;  %v22_v1 = vld [vmem:[#allocation2 + $0x8] sm:$0xff] }
  0x13   :  { %s66_s19 = sshll.u32 %s131_s18, 4  ;;  %v23_v2 = vld [vmem:[#allocation2 + $0x10] sm:$0xff]  ;;  %29 = vst [vmem:[#allocation5] sm:$0xff] %v21_v0  ;;  %37 = vst [vmem:[#allocation5 + $0x40] sm:$0xff] %v21_v0  ;;  %v24_v3 = vld [vmem:[#allocation2 + $0x18] sm:$0xff]  ;;  %s156_s19 = int_to_ptr.vmem [resolvable:$true] %s66_s19 }
  0x14   :  { %45 = vst [vmem:[#allocation5 + $0x80] sm:$0xff] %v21_v0  ;;  %53 = vst [vmem:[#allocation5 + $0xc0] sm:$0xff] %v21_v0  ;;  %v25_v4 = vld [vmem:[#allocation2 + $0x20] sm:$0xff]  ;;  %v26_v5 = vld [vmem:[#allocation2 + $0x28] sm:$0xff]  ;;  %s104_s0 = scalar_lea.vmem %s156_s19, 4096  ;;  %p109_p9 = scmp.lt.s32.totalorder %s156_s19, %s156_s19 }
  0x15   :  { %30 = vst [vmem:[#allocation5 + $0x8] sm:$0xff] %v22_v1  ;;  %38 = vst [vmem:[#allocation5 + $0x48] sm:$0xff] %v22_v1  ;;  %v27_v6 = vld [vmem:[#allocation2 + $0x30] sm:$0xff]  ;;  %v28_v7 = vld [vmem:[#allocation2 + $0x38] sm:$0xff]  ;;  %p105_p8 = scmp.ne.s32.totalorder %s156_s19, %s104_s0  ;;  %p110_p10 = scmp.lt.s32.totalorder %s104_s0, %s104_s0 }
  0x16   :  { %46 = vst [vmem:[#allocation5 + $0x88] sm:$0xff] %v22_v1  ;;  %54 = vst [vmem:[#allocation5 + $0xc8] sm:$0xff] %v22_v1 }
  0x17   :  { %31 = vst [vmem:[#allocation5 + $0x10] sm:$0xff] %v23_v2  ;;  %39 = vst [vmem:[#allocation5 + $0x50] sm:$0xff] %v23_v2  ;;  %p111_p11 = por %p110_p10, %p109_p9 }
  0x18   :  { %47 = vst [vmem:[#allocation5 + $0x90] sm:$0xff] %v23_v2  ;;  %55 = vst [vmem:[#allocation5 + $0xd0] sm:$0xff] %v23_v2 }
  0x19   :  { %32 = vst [vmem:[#allocation5 + $0x18] sm:$0xff] %v24_v3  ;;  %40 = vst [vmem:[#allocation5 + $0x58] sm:$0xff] %v24_v3  ;;  %p112_p12 = pnand %p111_p11, %p105_p8 }
  0x1a   :  { %48 = vst [vmem:[#allocation5 + $0x98] sm:$0xff] %v24_v3  ;;  %56 = vst [vmem:[#allocation5 + $0xd8] sm:$0xff] %v24_v3 }
  0x1b   :  { %33 = vst [vmem:[#allocation5 + $0x20] sm:$0xff] %v25_v4  ;;  %41 = vst [vmem:[#allocation5 + $0x60] sm:$0xff] %v25_v4 }
  0x1c   :  { %49 = vst [vmem:[#allocation5 + $0xa0] sm:$0xff] %v25_v4  ;;  %57 = vst [vmem:[#allocation5 + $0xe0] sm:$0xff] %v25_v4 }
  0x1d   :  { %34 = vst [vmem:[#allocation5 + $0x28] sm:$0xff] %v26_v5  ;;  %42 = vst [vmem:[#allocation5 + $0x68] sm:$0xff] %v26_v5 }
  0x1e   :  { %50 = vst [vmem:[#allocation5 + $0xa8] sm:$0xff] %v26_v5  ;;  %58 = vst [vmem:[#allocation5 + $0xe8] sm:$0xff] %v26_v5 }
  0x1f   :  { %35 = vst [vmem:[#allocation5 + $0x30] sm:$0xff] %v27_v6  ;;  %43 = vst [vmem:[#allocation5 + $0x70] sm:$0xff] %v27_v6 }
  0x20   :  { %51 = vst [vmem:[#allocation5 + $0xb0] sm:$0xff] %v27_v6  ;;  %59 = vst [vmem:[#allocation5 + $0xf0] sm:$0xff] %v27_v6 }
  0x21   :  { %36 = vst [vmem:[#allocation5 + $0x38] sm:$0xff] %v28_v7  ;;  %44 = vst [vmem:[#allocation5 + $0x78] sm:$0xff] %v28_v7 }
  0x22   :  { %52 = vst [vmem:[#allocation5 + $0xb8] sm:$0xff] %v28_v7  ;;  %60 = vst [vmem:[#allocation5 + $0xf8] sm:$0xff] %v28_v7 }
  0x23   :  { %115 = shalt.err (!%p112_p12)
}
  0x24   :  { %s116_s22 = scalar_lea.hbm %s176_s1, 4096 }
  0x25   :  { %p117_p13 = scmp.ne.s32.totalorder %s176_s1, %s116_s22  ;;  %p120_p0 = scmp.lt.u32.totalorder %s116_s22, %s176_s1 }
  0x27   :  { %p122_p1 = pnand %p120_p0, %p117_p13 }
  0x29   :  { %125 = shalt.err (!%p122_p1)
}
  0x2a   :  { %s132_s27 = smov 2048   ;;  %s133_s28 = smov 128  }
  0x2b   :  { %72 = dma.vmem_to_hbm [thread:$0]  %s156_s19, 4096, %s176_s1, [#allocation4], %s132_s27, %s132_s27, %s133_s28  }
  0x2c   :  { %128 = dma.done.wait [#allocation4], 4096  }
  0x2d   :  { %129 = vsyncadd [#allocation4], 4294963200 }
  0x2e   :  { %76 = vsyncpa [#allocation3], 1 }
  0x2f   :  { %77 = vsyncpa [#allocation4], 1 }

</bundles_post_ra>
